<compile_context>
chip_gen: v5e
topology: v5e:2x2
jax: 0.10.0
libtpu: 0.0.40
codegen_flags: <defaults>
</compile_context>

<pallas_src>
import jax
import jax.numpy as jnp
from jax.experimental import pallas as pl
from jax.experimental.pallas import tpu as pltpu


def mlp_kernel(xt_ref, w1_ref, b1_ref, w2_ref, b2_ref, w3t_ref, b3_ref, o_ref):
    # xt_ref: (2, TN) batch tile, features on the sublane axis, batch on lanes.
    xt = xt_ref[...]

    # layer_1: Linear(2 -> 32) + ReLU.  K=2 -> do it on the VPU as broadcast-FMAs
    # instead of wasting an MXU pass:  h1 = W1[:,0] (x) row0  +  W1[:,1] (x) row1  + b1
    h1 = (w1_ref[:, 0:1] * xt[0:1, :]
          + w1_ref[:, 1:2] * xt[1:2, :]
          + b1_ref[...])                       # (32, TN)
    h1 = jnp.maximum(h1, 0.0)

    # layer_2: Linear(32 -> 32) + ReLU on the MXU, f32 accumulation.
    h2 = jnp.dot(w2_ref[...], h1, preferred_element_type=jnp.float32) + b2_ref[...]
    h2 = jnp.maximum(h2, 0.0)                  # (32, TN)

    # layer_3: Linear(32 -> 1), no activation. 1-wide MXU output would hit masked
    # stores; use VPU multiply + XLU sublane-reduce instead.
    logits = jnp.sum(w3t_ref[...] * h2, axis=0, keepdims=True) + b3_ref[...]  # (1, TN)
    o_ref[...] = logits.astype(o_ref.dtype)


def circle_classification_forward(x, params, block_n=2048):
    """x: (N, 2) float32 -> logits (N, 1) float32."""
    w1, b1, w2, b2, w3t, b3 = params
    N = x.shape[0]

    # Batch tile: multiple of 128 lanes; large (2048) for HBM-streaming batches,
    # clamped down for tiny inputs so we don't over-pad.
    bn = min(block_n, ((N + 127) // 128) * 128)
    n_pad = pl.cdiv(N, bn) * bn

    # Feature-major, lane-dense layout: (2, N_pad), batch on the 128-wide lane axis.
    xt = jnp.pad(x.T, ((0, 0), (0, n_pad - N)))

    grid = (n_pad // bn,)
    resident = lambda shape: pl.BlockSpec(shape, lambda i: tuple(0 for _ in shape))

    out_t = pl.pallas_call(
        mlp_kernel,
        out_shape=jax.ShapeDtypeStruct((1, n_pad), jnp.float32),
        grid=grid,
        in_specs=[
            pl.BlockSpec((2, bn), lambda i: (0, i)),   # streamed batch tile
            resident(w1.shape), resident(b1.shape),     # weights stay in VMEM
            resident(w2.shape), resident(b2.shape),
            resident(w3t.shape), resident(b3.shape),
        ],
        out_specs=pl.BlockSpec((1, bn), lambda i: (0, i)),  # lane-dense logits tile
        compiler_params=pltpu.CompilerParams(
            dimension_semantics=("parallel",),          # megacore sharding on v7x
        ),
    )(xt, w1, b1, w2, b2, w3t, b3)

    # Un-pad and restore the PyTorch (N, 1) shape outside the kernel.
    return out_t[0, :N].reshape(N, 1)


def init_params(key):
    """Deterministic init mimicking nn.Linear's U(-1/sqrt(fan_in), 1/sqrt(fan_in)).

    Layouts chosen for the feature-major kernel:
      w1:  (32, 2)   (PyTorch layer_1.weight layout)
      b1:  (32, 1)
      w2:  (32, 32)  (PyTorch layer_2.weight layout)
      b2:  (32, 1)
      w3t: (32, 1)   (transpose of PyTorch layer_3.weight)
      b3:  (1, 1)
    """
    def linear(key, fan_in, fan_out):
        kw, kb = jax.random.split(key)
        bound = 1.0 / jnp.sqrt(jnp.float32(fan_in))
        w = jax.random.uniform(kw, (fan_out, fan_in), jnp.float32, -bound, bound)
        b = jax.random.uniform(kb, (fan_out, 1), jnp.float32, -bound, bound)
        return w, b

    k1, k2, k3 = jax.random.split(key, 3)
    w1, b1 = linear(k1, 2, 32)    # (32, 2), (32, 1)
    w2, b2 = linear(k2, 32, 32)   # (32, 32), (32, 1)
    w3, b3 = linear(k3, 32, 1)    # (1, 32), (1, 1)
    w3t = w3.T                    # (32, 1) so the kernel avoids an in-kernel transpose
    return (w1, b1, w2, b2, w3t, b3)


if __name__ == "__main__":
    key = jax.random.PRNGKey(0)
    k_params, k_x = jax.random.split(key)

    params = init_params(k_params)
    x = jax.random.normal(k_x, (8, 2), jnp.float32)  # batch of 8 2-D points

    logits = jax.block_until_ready(circle_classification_forward(x, params))

    # Reference check in plain JAX (same math as the PyTorch forward).
    w1, b1, w2, b2, w3t, b3 = params
    h1 = jnp.maximum(x @ w1.T + b1.T, 0.0)
    h2 = jnp.maximum(h1 @ w2.T + b2.T, 0.0)
    ref = h2 @ w3t + b3

    assert logits.shape == (8, 1)
    assert jnp.allclose(logits, ref, atol=1e-5, rtol=1e-5)

    print("KERNEL_OK")
</pallas_src>

<mosaic_0001>
module attributes {stable_mosaic.version = 11 : i64} {
  func.func @mlp_kernel(%arg0: i32, %arg1: memref<2x128xf32, #tpu.memory_space<vmem>>, %arg2: memref<32x2xf32, #tpu.memory_space<vmem>>, %arg3: memref<32x1xf32, #tpu.memory_space<vmem>>, %arg4: memref<32x32xf32, #tpu.memory_space<vmem>>, %arg5: memref<32x1xf32, #tpu.memory_space<vmem>>, %arg6: memref<32x1xf32, #tpu.memory_space<vmem>>, %arg7: memref<1x1xf32, #tpu.memory_space<vmem>>, %arg8: memref<1x128xf32, #tpu.memory_space<vmem>>) attributes {dimension_semantics = [#tpu.dimension_semantics<parallel>], iteration_bounds = array<i64: 1>, scalar_prefetch = 0 : i64, scratch_operands = 0 : i64, tpu.core_type = #tpu.core_type<tc>, window_params = [{transform_indices = @transform_0, window_bounds = array<i64: 2, 128>}, {pipeline_mode = #tpu.pipeline_mode<synchronous>, transform_indices = @transform_1, window_bounds = array<i64: 32, 2>}, {pipeline_mode = #tpu.pipeline_mode<synchronous>, transform_indices = @transform_2, window_bounds = array<i64: 32, 1>}, {pipeline_mode = #tpu.pipeline_mode<synchronous>, transform_indices = @transform_3, window_bounds = array<i64: 32, 32>}, {pipeline_mode = #tpu.pipeline_mode<synchronous>, transform_indices = @transform_4, window_bounds = array<i64: 32, 1>}, {pipeline_mode = #tpu.pipeline_mode<synchronous>, transform_indices = @transform_5, window_bounds = array<i64: 32, 1>}, {pipeline_mode = #tpu.pipeline_mode<synchronous>, transform_indices = @transform_6, window_bounds = array<i64: 1, 1>}, {transform_indices = @transform_7, window_bounds = array<i64: 1, 128>}]} {
    %c0 = arith.constant 0 : index
    %c0_0 = arith.constant 0 : index
    %0 = vector.load %arg1[%c0, %c0_0] : memref<2x128xf32, #tpu.memory_space<vmem>>, vector<2x128xf32>
    %c0_1 = arith.constant 0 : index
    %c0_2 = arith.constant 0 : index
    %1 = vector.load %arg2[%c0_1, %c0_2] : memref<32x2xf32, #tpu.memory_space<vmem>>, vector<32x1xf32>
    %2 = vector.extract_strided_slice %0 {offsets = [0, 0], sizes = [1, 128], strides = [1, 1]} : vector<2x128xf32> to vector<1x128xf32>
    %3 = vector.broadcast %1 : vector<32x1xf32> to vector<32x128xf32>
    %4 = vector.broadcast %2 : vector<1x128xf32> to vector<32x128xf32>
    %5 = arith.mulf %3, %4 : vector<32x128xf32>
    %c0_3 = arith.constant 0 : index
    %c1 = arith.constant 1 : index
    %6 = vector.load %arg2[%c0_3, %c1] : memref<32x2xf32, #tpu.memory_space<vmem>>, vector<32x1xf32>
    %7 = vector.extract_strided_slice %0 {offsets = [1, 0], sizes = [1, 128], strides = [1, 1]} : vector<2x128xf32> to vector<1x128xf32>
    %8 = vector.broadcast %6 : vector<32x1xf32> to vector<32x128xf32>
    %9 = vector.broadcast %7 : vector<1x128xf32> to vector<32x128xf32>
    %10 = arith.mulf %8, %9 : vector<32x128xf32>
    %11 = arith.addf %5, %10 : vector<32x128xf32>
    %c0_4 = arith.constant 0 : index
    %c0_5 = arith.constant 0 : index
    %12 = vector.load %arg3[%c0_4, %c0_5] : memref<32x1xf32, #tpu.memory_space<vmem>>, vector<32x1xf32>
    %13 = vector.broadcast %12 : vector<32x1xf32> to vector<32x128xf32>
    %14 = arith.addf %11, %13 : vector<32x128xf32>
    %cst = arith.constant 0.000000e+00 : f32
    %15 = vector.broadcast %cst : f32 to vector<32x128xf32>
    %16 = arith.maximumf %14, %15 : vector<32x128xf32>
    %c0_6 = arith.constant 0 : index
    %c0_7 = arith.constant 0 : index
    %17 = vector.load %arg4[%c0_6, %c0_7] : memref<32x32xf32, #tpu.memory_space<vmem>>, vector<32x32xf32>
    %cst_8 = arith.constant dense<0.000000e+00> : vector<32x128xf32>
    %18 = tpu.matmul %17, %16, %cst_8 {dimension_numbers = #tpu.dot_dimension_numbers<[1], [0], [0], [1], [0, 0, 1, 1], [], []>} : vector<32x32xf32>, vector<32x128xf32>, vector<32x128xf32> -> vector<32x128xf32>
    %c0_9 = arith.constant 0 : index
    %c0_10 = arith.constant 0 : index
    %19 = vector.load %arg5[%c0_9, %c0_10] : memref<32x1xf32, #tpu.memory_space<vmem>>, vector<32x1xf32>
    %20 = vector.broadcast %19 : vector<32x1xf32> to vector<32x128xf32>
    %21 = arith.addf %18, %20 : vector<32x128xf32>
    %cst_11 = arith.constant 0.000000e+00 : f32
    %22 = vector.broadcast %cst_11 : f32 to vector<32x128xf32>
    %23 = arith.maximumf %21, %22 : vector<32x128xf32>
    %c0_12 = arith.constant 0 : index
    %c0_13 = arith.constant 0 : index
    %24 = vector.load %arg6[%c0_12, %c0_13] : memref<32x1xf32, #tpu.memory_space<vmem>>, vector<32x1xf32>
    %25 = vector.broadcast %24 : vector<32x1xf32> to vector<32x128xf32>
    %26 = arith.mulf %25, %23 : vector<32x128xf32>
    %cst_14 = arith.constant dense<0.000000e+00> : vector<128xf32>
    %27 = vector.multi_reduction <add>, %26, %cst_14 [0] : vector<32x128xf32> to vector<128xf32>
    %28 = vector.shape_cast %27 : vector<128xf32> to vector<1x128xf32>
    %c0_15 = arith.constant 0 : index
    %c0_16 = arith.constant 0 : index
    %29 = vector.load %arg7[%c0_15, %c0_16] : memref<1x1xf32, #tpu.memory_space<vmem>>, vector<1x1xf32>
    %30 = vector.broadcast %29 : vector<1x1xf32> to vector<1x128xf32>
    %31 = arith.addf %28, %30 : vector<1x128xf32>
    %c0_17 = arith.constant 0 : index
    %c0_18 = arith.constant 0 : index
    %32 = vector.load %arg8[%c0_17, %c0_18] : memref<1x128xf32, #tpu.memory_space<vmem>>, vector<1x128xf32>
    tpu.vector_store %arg8[%c0_17, %c0_18], %31 {strides = array<i32>} : memref<1x128xf32, #tpu.memory_space<vmem>>, vector<1x128xf32>,
    return
  }
  func.func @transform_0(%arg0: i32) -> (i32, i32) {
    %c0_i32 = arith.constant 0 : i32
    %c0_i32_0 = arith.constant 0 : i32
    return %c0_i32, %arg0 : i32, i32
  }
  func.func @transform_1(%arg0: i32) -> (i32, i32) {
    %c0_i32 = arith.constant 0 : i32
    %c0_i32_0 = arith.constant 0 : i32
    %c0_i32_1 = arith.constant 0 : i32
    return %c0_i32, %c0_i32_0 : i32, i32
  }
  func.func @transform_2(%arg0: i32) -> (i32, i32) {
    %c0_i32 = arith.constant 0 : i32
    %c0_i32_0 = arith.constant 0 : i32
    %c0_i32_1 = arith.constant 0 : i32
    return %c0_i32, %c0_i32_0 : i32, i32
  }
  func.func @transform_3(%arg0: i32) -> (i32, i32) {
    %c0_i32 = arith.constant 0 : i32
    %c0_i32_0 = arith.constant 0 : i32
    %c0_i32_1 = arith.constant 0 : i32
    return %c0_i32, %c0_i32_0 : i32, i32
  }
  func.func @transform_4(%arg0: i32) -> (i32, i32) {
    %c0_i32 = arith.constant 0 : i32
    %c0_i32_0 = arith.constant 0 : i32
    %c0_i32_1 = arith.constant 0 : i32
    return %c0_i32, %c0_i32_0 : i32, i32
  }
  func.func @transform_5(%arg0: i32) -> (i32, i32) {
    %c0_i32 = arith.constant 0 : i32
    %c0_i32_0 = arith.constant 0 : i32
    %c0_i32_1 = arith.constant 0 : i32
    return %c0_i32, %c0_i32_0 : i32, i32
  }
  func.func @transform_6(%arg0: i32) -> (i32, i32) {
    %c0_i32 = arith.constant 0 : i32
    %c0_i32_0 = arith.constant 0 : i32
    %c0_i32_1 = arith.constant 0 : i32
    return %c0_i32, %c0_i32_0 : i32, i32
  }
  func.func @transform_7(%arg0: i32) -> (i32, i32) {
    %c0_i32 = arith.constant 0 : i32
    %c0_i32_0 = arith.constant 0 : i32
    return %c0_i32, %arg0 : i32, i32
  }
}

</mosaic_0001>

<bundles_post_ra>
// kernel: tpu_custom_call.1
= control target key start
LH: loop header
LB: loop body
LE: loop exit
PB: predicated region body
PF: predicated region fallthrough
CT: control target
= control target key end

     0   :  { %s418_s0 = inlined_call_operand.vmem [shape: f32[2,128], index: 0, kind: input, shape index: {}]   ;;  %s419_s1 = inlined_call_operand.vmem [shape: f32[32,2], index: 1, kind: input, shape index: {}]   ;;  %s420_s2 = inlined_call_operand.vmem [shape: f32[32,1], index: 2, kind: input, shape index: {}]   ;;  %s421_s3 = inlined_call_operand.vmem [shape: f32[32,32], index: 3, kind: input, shape index: {}]   ;;  %s422_s4 = inlined_call_operand.vmem [shape: f32[32,1], index: 4, kind: input, shape index: {}]   ;;  %s423_s5 = inlined_call_operand.vmem [shape: f32[32,1], index: 5, kind: input, shape index: {}]   ;;  %s424_s6 = inlined_call_operand.<no memory space> [shape: f32[1,1], index: 6, kind: input, shape index: {}]   ;;  %s425_s7 = inlined_call_operand.hbm [shape: f32[1,128], index: 7, kind: output, shape index: {}]  }
   0x1   :  { %v12_v0 = vstv %s424_s6 }
   0x2   :  { %13 = vst [vmem:[#allocation2] sm:$0x1] %v12_v0 }
   0x3   :  { %v33_v1 = vld [vmem:[%s419_s1 + $0x18] sm:$0xff]  ;;  %v32_v2 = vld [vmem:[%s419_s1 + $0x10] sm:$0xff]  ;;  %v31_v3 = vld [vmem:[%s419_s1 + $0x8] sm:$0xff]  ;;  %v306_v4 = vmov 0  }
   0x4   :  { %275 = vset.pattern.permute.xlu2 %v306_v4  ;;  %273 = vset.pattern.permute.xlu1 %v306_v4 }
   0x5   :  { %271 = vset.pattern.permute.xlu0 %v306_v4  ;;  %46 = vperm.xlu1 %273, %v32_v2  }
   0x6   :  { %51 = vperm.xlu0 %271, %v33_v1   ;;  %41 = vperm.xlu2 %275, %v31_v3  }
   0x7   :  { %14 = vsyncpa [#allocation4], 0  ;;  %v307_v5 = vmov 1   ;;  %v30_v6 = vld [vmem:[%s419_s1] sm:$0xff]  ;;  %v87_v7 = vld [vmem:[%s420_s2 + $0x18] sm:$0xff]  ;;  %vm144_vm0 = vcmask 261120  }
   0x8   :  { %v86_v8 = vld [vmem:[%s420_s2 + $0x10] sm:$0xff]  ;;  %v84_v9 = vld [vmem:[%s420_s2] sm:$0xff]  ;;  %v85_v10 = vld [vmem:[%s420_s2 + $0x8] sm:$0xff]  ;;  %s243_s1 = sshll.u32 %s425_s7, 4  ;;  %s244_s1 = int_to_ptr.hbm [resolvable:$true] %s243_s1 }
   0x9   :  { %v120_v11 = vld [vmem:[%s422_s4] sm:$0xff]  ;;  %v121_v13 = vld [vmem:[%s422_s4 + $0x8] sm:$0xff]  ;;  %v122_v14 = vld [vmem:[%s422_s4 + $0x10] sm:$0xff] }
   0xa   :  { %v190_v12 = vld [vmem:[%s423_s5] sm:$0xff]  ;;  %v193_v15 = vld [vmem:[%s423_s5 + $0x18] sm:$0xff]  ;;  %v191_v17 = vld [vmem:[%s423_s5 + $0x8] sm:$0xff] }
   0xb   :  { %v123_v16 = vld [vmem:[%s422_s4 + $0x18] sm:$0xff]  ;;  %v192_v18 = vld [vmem:[%s423_s5 + $0x10] sm:$0xff]  ;;  %v227_v19 = vld [vmem:[#allocation2] sm:$0x1] }
   0xc   :  { %v29_v26 = vld [vmem:[%s418_s0] sm:$0x3]  ;;  %v117_v56 = vld [vmem:[%s421_s3 + $0x8] sm:$0xff]  ;;  %v118_v57 = vld [vmem:[%s421_s3 + $0x10] sm:$0xff] }
   0xd   :  { %274 = vset.pattern.permute.xlu1 %v307_v5  ;;  %v75_v27 = vperm.slane %v29_v26, 1  ;;  %v54_v28 = vperm.slane %v29_v26, 0  ;;  %v116_v55 = vld [vmem:[%s421_s3] sm:$0xff]  ;;  %v119_v58 = vld [vmem:[%s421_s3 + $0x18] sm:$0xff]  ;;  %s308_s3 = smov [#allocation3]  }
   0xe   :  { %272 = vset.pattern.permute.xlu0 %v307_v5  ;;  %276 = vset.pattern.permute.xlu2 %v307_v5  ;;  %s241_s15 = sshll.u32 %s308_s3, 4  ;;  %s242_s15 = int_to_ptr.vmem [resolvable:$true] %s241_s15 }
   0xf   :  { %72 = vperm.xlu0 %272, %v33_v1   ;;  %68 = vperm.xlu1 %274, %v32_v2  }
  0x10   :  { %64 = vperm.xlu2 %276, %v31_v3  }
  0x17   :  { %277 = vset.pattern.permute.xlu1 %v306_v4  ;;  %60 = vperm.xlu0 %272, %v30_v6  }
  0x18   :  { %278 = vset.pattern.permute.xlu2 %v306_v4  ;;  %105 = vperm.xlu1 %277, %v87_v7  }
  0x19   :  { %36 = vperm.xlu2 %278, %v30_v6  }
  0x1f   :  { %279 = vset.pattern.permute.xlu0 %v306_v4 }
  0x20   :  { %100 = vperm.xlu1 %277, %v86_v8   ;;  %90 = vperm.xlu0 %279, %v84_v9  }
  0x21   :  { %95 = vperm.xlu2 %278, %v85_v10  }
  0x28   :  { %126 = vperm.xlu1 %277, %v120_v11   ;;  %196 = vperm.xlu0 %279, %v190_v12  }
  0x29   :  { %131 = vperm.xlu2 %278, %v121_v13  }
  0x30   :  { %136 = vperm.xlu1 %277, %v122_v14   ;;  %211 = vperm.xlu0 %279, %v193_v15  }
  0x31   :  { %141 = vperm.xlu2 %278, %v123_v16  }
  0x38   :  { %201 = vperm.xlu1 %277, %v191_v17  }
  0x39   :  { %206 = vperm.xlu2 %278, %v192_v18  }
  0x40   :  { %230 = vperm.xlu1 %277, %v227_v19  }
  0x60   :  { %v42_v20 = vpop.permute.xlu2 %41 }
  0x61   :  { %v56_v34 = vmul.f32 %v54_v28, %v42_v20 }
  0x6a   :  { %v65_v23 = vpop.permute.xlu2 %64 }
  0x6b   :  { %v77_v35 = vmul.f32 %v75_v27, %v65_v23 }
  0x6d   :  { %v81_v40 = vadd.f32 %v77_v35, %v56_v34 }
  0x73   :  { %v37_v30 = vpop.permute.xlu2 %36 }
  0x74   :  { %v55_v41 = vmul.f32 %v54_v28, %v37_v30 }
  0x77   :  { %v47_v21 = vpop.permute.xlu1 %46 }
  0x78   :  { %v52_v22 = vpop.permute.xlu0 %51  ;;  %v57_v42 = vmul.f32 %v54_v28, %v47_v21 }
  0x79   :  { %v58_v31 = vmul.f32 %v54_v28, %v52_v22 }
  0x7b   :  { %v96_v44 = vpop.permute.xlu2 %95 }
  0x7c   :  { %v109_v48 = vadd.f32 %v96_v44, %v81_v40 }
  0x7e   :  { %v113_v53 = vmax.f32 %v109_v48, 0.0 }
  0x81   :  { %v73_v24 = vpop.permute.xlu0 %72  ;;  %v69_v25 = vpop.permute.xlu1 %68 }
  0x82   :  { %v79_v29 = vmul.f32 %v75_v27, %v73_v24  ;;  %v78_v38 = vmul.f32 %v75_v27, %v69_v25 }
  0x83   :  { %v132_v60 = vpop.permute.xlu2 %131 }
  0x84   :  { %v83_v33 = vadd.f32 %v79_v29, %v58_v31  ;;  %v82_v45 = vadd.f32 %v78_v38, %v57_v42 }
  0x89   :  { %v61_v32 = vpop.permute.xlu0 %60 }
  0x8a   :  { %v106_v36 = vpop.permute.xlu1 %105  ;;  %v76_v43 = vmul.f32 %v75_v27, %v61_v32 }
  0x8b   :  { %v111_v37 = vadd.f32 %v106_v36, %v83_v33  ;;  %v142_v0 = vpop.permute.xlu2 %141 }
  0x8c   :  { %v80_v50 = vadd.f32 %v76_v43, %v55_v41 }
  0x8d   :  { %v115_v39 = vmax.f32 %v111_v37, 0.0 }
  0x8f   :  { %169 = vmatpush.msra.mxu0 %v115_v39  ;;  %256 = vmatpush.msra.mxu1 %v115_v39 }
  0x90   :  { %257 = vmatpush.msra.mxu2 %v115_v39  ;;  %258 = vmatpush.msra.mxu3 %v115_v39 }
  0x92   :  { %v101_v46 = vpop.permute.xlu1 %100  ;;  %v91_v47 = vpop.permute.xlu0 %90 }
  0x93   :  { %v110_v49 = vadd.f32 %v101_v46, %v82_v45  ;;  %v108_v52 = vadd.f32 %v91_v47, %v80_v50  ;;  %v207_v15 = vpop.permute.xlu2 %206 }
  0x95   :  { %v114_v51 = vmax.f32 %v110_v49, 0.0  ;;  %v112_v54 = vmax.f32 %v108_v52, 0.0 }
  0x97   :  { %170 = vmatpush.msra.mxu0 %v114_v51  ;;  %259 = vmatpush.msra.mxu1 %v114_v51 }
  0x98   :  { %260 = vmatpush.msra.mxu2 %v114_v51  ;;  %261 = vmatpush.msra.mxu3 %v114_v51 }
  0x99   :  { %171 = vmatpush.msra.mxu0 %v113_v53  ;;  %262 = vmatpush.msra.mxu1 %v113_v53 }
  0x9a   :  { %263 = vmatpush.msra.mxu2 %v113_v53  ;;  %264 = vmatpush.msra.mxu3 %v113_v53  ;;  %v127_v59 = vpop.permute.xlu1 %126  ;;  %v197_v3 = vpop.permute.xlu0 %196 }
  0x9b   :  { %172 = vmatpush.msra.mxu0 %v112_v54  ;;  %265 = vmatpush.msra.mxu1 %v112_v54 }
  0x9c   :  { %266 = vmatpush.msra.mxu2 %v112_v54  ;;  %267 = vmatpush.msra.mxu3 %v112_v54 }
  0x9d   :  { %252 = vmatmul.msk.f32.vlgmr.msra.gmra.mxu0 %vm144_vm0, %v116_v55  ;;  %253 = vmatmul.msk.f32.vlgmr.msra.gmra.mxu1 %vm144_vm0, %v117_v56 }
  0x9e   :  { %254 = vmatmul.msk.f32.vlgmr.msra.gmra.mxu2 %vm144_vm0, %v118_v57  ;;  %255 = vmatmul.msk.f32.vlgmr.msra.gmra.mxu3 %vm144_vm0, %v119_v58 }
  0xa2   :  { %v137_v61 = vpop.permute.xlu1 %136  ;;  %v212_v18 = vpop.permute.xlu0 %211 }
  0xaa   :  { %v202_v6 = vpop.permute.xlu1 %201 }
  0xb2   :  { %v231_v26 = vpop.permute.xlu1 %230 }
  0xb3   :  { %v233_v28 = vperm.slane %v231_v26, 0 }
 0x11a   :  { %v174_v62 = vpop.f32.mrf.mxu0  ;;  %v177_v63 = vpop.f32.mrf.mxu1 }
 0x11b   :  { %v175_v1 = vadd.f32 %v174_v62, %v127_v59  ;;  %v178_v2 = vadd.f32 %v177_v63, %v132_v60 }
 0x11d   :  { %v186_v4 = vmax.f32 %v175_v1, 0.0  ;;  %v187_v5 = vmax.f32 %v178_v2, 0.0 }
 0x11f   :  { %v214_v9 = vmul.f32 %v197_v3, %v186_v4  ;;  %v215_v10 = vmul.f32 %v202_v6, %v187_v5 }
 0x121   :  { %v180_v7 = vpop.f32.mrf.mxu2  ;;  %v183_v8 = vpop.f32.mrf.mxu3  ;;  %v218_v16 = vadd.f32 %v215_v10, %v214_v9 }
 0x122   :  { %v181_v11 = vadd.f32 %v180_v7, %v137_v61  ;;  %v184_v12 = vadd.f32 %v183_v8, %v142_v0 }
 0x124   :  { %v188_v13 = vmax.f32 %v181_v11, 0.0  ;;  %v189_v14 = vmax.f32 %v184_v12, 0.0 }
 0x126   :  { %v216_v17 = vmul.f32 %v207_v15, %v188_v13  ;;  %v217_v20 = vmul.f32 %v212_v18, %v189_v14 }
 0x128   :  { %v219_v19 = vadd.f32 %v218_v16, %v216_v17 }
 0x12a   :  { %v220_v21 = vadd.f32 %v219_v19, %v217_v20 }
 0x12c   :  { %v221_v22 = vrot.slane %v220_v21, 4 }
 0x12e   :  { %v222_v23 = vadd.f32 %v221_v22, %v220_v21 }
 0x130   :  { %v223_v24 = vrot.slane %v222_v23, 2 }
 0x132   :  { %v224_v25 = vadd.f32 %v223_v24, %v222_v23 }
 0x134   :  { %v225_v27 = vrot.slane %v224_v25, 1 }
 0x136   :  { %v226_v29 = vadd.f32 %v225_v27, %v224_v25 }
 0x138   :  { %v234_v30 = vadd.f32 %v233_v28, %v226_v29 }
 0x13a   :  { %235 = vst [vmem:[#allocation3] sm:$0x1] %v234_v30 }
 0x13b   :  { %246 = dma.vmem_to_hbm [thread:$0]  %s242_s15, 16, %s244_s1, [#allocation4]  }
 0x13c   :  { %304 = dma.done.wait [#allocation4], 16  }
 0x13d   :  { %305 = vsyncadd [#allocation4], 4294967280 }
 0x13e   :  { %251 = vsyncpa [#allocation4], 1 }

</bundles_post_ra>
